<compile_context>
chip_gen: v6e
topology: v6e:2x2x1
jax: 0.10.0
libtpu: 0.0.40
codegen_flags: <defaults>
</compile_context>

<pallas_src>
import jax
import jax.numpy as jnp
from jax.experimental import pallas as pl
from jax.experimental.pallas import tpu as pltpu

OUT_PAD = 8  # final (3-wide) layer padded to 8 lanes; sliced back in the wrapper


def _round_up(n, m):
    return ((n + m - 1) // m) * m


def mlp_kernel(x_ref, w1_ref, b1_ref, w2_ref, b2_ref, w3_ref, b3_ref, o_ref):
    # x arrives as f32; cast to bf16 in-kernel (VPU, hidden under DMA).
    # All matmuls accumulate in f32 on the MXU; bias adds + ReLUs in f32.
    x = x_ref[...].astype(jnp.bfloat16)
    h1 = jnp.dot(x, w1_ref[...], preferred_element_type=jnp.float32) + b1_ref[...]
    h1 = jnp.maximum(h1, 0.0).astype(jnp.bfloat16)
    h2 = jnp.dot(h1, w2_ref[...], preferred_element_type=jnp.float32) + b2_ref[...]
    h2 = jnp.maximum(h2, 0.0).astype(jnp.bfloat16)
    out = jnp.dot(h2, w3_ref[...], preferred_element_type=jnp.float32) + b3_ref[...]
    o_ref[...] = out.astype(o_ref.dtype)


def prepare_params(params):
    """One-time param prep: pad the final layer to OUT_PAD lanes and pre-cast
    weights to bf16 (biases stay f32; they add onto the f32 accumulators)."""
    w1, b1 = params["w1"], params["b1"]   # (D, 64), (1, 64)
    w2, b2 = params["w2"], params["b2"]   # (64, 32), (1, 32)
    w3, b3 = params["w3"], params["b3"]   # (32, 3),  (1, 3)
    out = w3.shape[1]
    w3p = jnp.zeros((w3.shape[0], OUT_PAD), w3.dtype).at[:, :out].set(w3)
    b3p = jnp.zeros((1, OUT_PAD), b3.dtype).at[:, :out].set(b3)
    return {
        "w1": w1.astype(jnp.bfloat16), "b1": b1,
        "w2": w2.astype(jnp.bfloat16), "b2": b2,
        "w3": w3p.astype(jnp.bfloat16), "b3": b3p,
        "out_dim": out,
    }


def _pick_tile(B, batch_tile):
    # Aim for >= 2 grid steps (both TensorCores on v7x) by capping the tile at
    # half the batch, rounded to a sublane multiple; never exceed batch_tile.
    half = _round_up(pl.cdiv(B, 2), 8)
    return max(8, min(batch_tile, half))


def berth_allocation_forward(x, prepped, *, batch_tile=1024):
    """x: (B, input_dim) float32.  prepped: output of prepare_params().

    Returns (B, 3) float32, matching the PyTorch module's forward.
    """
    B, D = x.shape
    w1, b1 = prepped["w1"], prepped["b1"]
    w2, b2 = prepped["w2"], prepped["b2"]
    w3, b3 = prepped["w3"], prepped["b3"]
    H1, H2 = w1.shape[1], w2.shape[1]
    out_dim = prepped["out_dim"]

    tile = _pick_tile(B, batch_tile)
    grid = (pl.cdiv(B, tile),)  # ragged last block handled by Pallas (masked stores)

    rep = lambda i: (0, 0)  # weights/biases: same (only) block every grid step
    out_padded = pl.pallas_call(
        mlp_kernel,
        out_shape=jax.ShapeDtypeStruct((B, OUT_PAD), jnp.float32),
        grid=grid,
        in_specs=[
            pl.BlockSpec((tile, D), lambda i: (i, 0)),
            pl.BlockSpec((D, H1), rep),
            pl.BlockSpec((1, H1), rep),
            pl.BlockSpec((H1, H2), rep),
            pl.BlockSpec((1, H2), rep),
            pl.BlockSpec((H2, OUT_PAD), rep),
            pl.BlockSpec((1, OUT_PAD), rep),
        ],
        out_specs=pl.BlockSpec((tile, OUT_PAD), lambda i: (i, 0)),
        compiler_params=pltpu.CompilerParams(
            dimension_semantics=("parallel",),
            vmem_limit_bytes=32 * 1024 * 1024,  # safe on v7x (64 MiB physical VMEM)
        ),
    )(x, w1, b1, w2, b2, w3, b3)

    return out_padded[:, :out_dim]


def init_params(key, input_dim):
    """Deterministic synthetic params matching the PyTorch module's shapes.

    PyTorch stores Linear weight as (out, in); here we keep (in, out) so the
    kernel computes x @ W + b with identical semantics.
    """
    k1, k2, k3, k4, k5, k6 = jax.random.split(key, 6)
    scale = 0.1
    return {
        "w1": scale * jax.random.normal(k1, (input_dim, 64), jnp.float32),
        "b1": scale * jax.random.normal(k2, (1, 64), jnp.float32),
        "w2": scale * jax.random.normal(k3, (64, 32), jnp.float32),
        "b2": scale * jax.random.normal(k4, (1, 32), jnp.float32),
        "w3": scale * jax.random.normal(k5, (32, 3), jnp.float32),
        "b3": scale * jax.random.normal(k6, (1, 3), jnp.float32),
    }


def reference_forward(x, params):
    h1 = jnp.maximum(x @ params["w1"] + params["b1"], 0.0)
    h2 = jnp.maximum(h1 @ params["w2"] + params["b2"], 0.0)
    return h2 @ params["w3"] + params["b3"]


if __name__ == "__main__":
    key = jax.random.PRNGKey(0)
    kx, kp = jax.random.split(key)

    input_dim = 16
    batch = 16

    x = jax.random.normal(kx, (batch, input_dim), jnp.float32)
    params = init_params(kp, input_dim)
    prepped = prepare_params(params)  # one-time weight prep (pad + bf16 cast)

    # Default path: tile picker halves the batch -> 2-step parallel grid.
    out = jax.block_until_ready(berth_allocation_forward(x, prepped))
    ref = reference_forward(x, params)
    assert out.shape == (batch, 3)
    # bf16 weights / in-kernel bf16 cast with f32 accumulation -> small delta.
    assert jnp.allclose(out, ref, atol=2e-2, rtol=2e-2), "mismatch vs reference"

    # Also exercise a ragged batch (B not a multiple of the tile): grid of 2
    # with a masked last block, no wrapper-side padding pass over x.
    x2 = jax.random.normal(jax.random.PRNGKey(1), (20, input_dim), jnp.float32)
    out2 = jax.block_until_ready(berth_allocation_forward(x2, prepped, batch_tile=16))
    ref2 = reference_forward(x2, params)
    assert out2.shape == (20, 3)
    assert jnp.allclose(out2, ref2, atol=2e-2, rtol=2e-2), "mismatch vs reference (ragged)"

    print("KERNEL_OK")
</pallas_src>

<mosaic_0001>
module attributes {stable_mosaic.version = 11 : i64} {
  func.func @mlp_kernel(%arg0: i32, %arg1: memref<8x16xf32, #tpu.memory_space<vmem>>, %arg2: memref<16x64xbf16, #tpu.memory_space<vmem>>, %arg3: memref<1x64xf32, #tpu.memory_space<vmem>>, %arg4: memref<64x32xbf16, #tpu.memory_space<vmem>>, %arg5: memref<1x32xf32, #tpu.memory_space<vmem>>, %arg6: memref<32x8xbf16, #tpu.memory_space<vmem>>, %arg7: memref<1x8xf32, #tpu.memory_space<vmem>>, %arg8: memref<8x8xf32, #tpu.memory_space<vmem>>) attributes {dimension_semantics = [#tpu.dimension_semantics<parallel>], iteration_bounds = array<i64: 2>, scalar_prefetch = 0 : i64, scratch_operands = 0 : i64, tpu.core_type = #tpu.core_type<tc>, window_params = [{transform_indices = @transform_0, window_bounds = array<i64: 8, 16>}, {pipeline_mode = #tpu.pipeline_mode<synchronous>, transform_indices = @transform_1, window_bounds = array<i64: 16, 64>}, {pipeline_mode = #tpu.pipeline_mode<synchronous>, transform_indices = @transform_2, window_bounds = array<i64: 1, 64>}, {pipeline_mode = #tpu.pipeline_mode<synchronous>, transform_indices = @transform_3, window_bounds = array<i64: 64, 32>}, {pipeline_mode = #tpu.pipeline_mode<synchronous>, transform_indices = @transform_4, window_bounds = array<i64: 1, 32>}, {pipeline_mode = #tpu.pipeline_mode<synchronous>, transform_indices = @transform_5, window_bounds = array<i64: 32, 8>}, {pipeline_mode = #tpu.pipeline_mode<synchronous>, transform_indices = @transform_6, window_bounds = array<i64: 1, 8>}, {transform_indices = @transform_7, window_bounds = array<i64: 8, 8>}]} {
    %c0 = arith.constant 0 : index
    %c0_0 = arith.constant 0 : index
    %0 = vector.load %arg1[%c0, %c0_0] : memref<8x16xf32, #tpu.memory_space<vmem>>, vector<8x16xf32>
    %1 = arith.truncf %0 : vector<8x16xf32> to vector<8x16xbf16>
    %c0_1 = arith.constant 0 : index
    %c0_2 = arith.constant 0 : index
    %2 = vector.load %arg2[%c0_1, %c0_2] : memref<16x64xbf16, #tpu.memory_space<vmem>>, vector<16x64xbf16>
    %cst = arith.constant dense<0.000000e+00> : vector<8x64xf32>
    %3 = tpu.matmul %1, %2, %cst {dimension_numbers = #tpu.dot_dimension_numbers<[1], [0], [0], [1], [0, 0, 1, 1], [], []>} : vector<8x16xbf16>, vector<16x64xbf16>, vector<8x64xf32> -> vector<8x64xf32>
    %c0_3 = arith.constant 0 : index
    %c0_4 = arith.constant 0 : index
    %4 = vector.load %arg3[%c0_3, %c0_4] : memref<1x64xf32, #tpu.memory_space<vmem>>, vector<1x64xf32>
    %5 = vector.broadcast %4 : vector<1x64xf32> to vector<8x64xf32>
    %6 = arith.addf %3, %5 : vector<8x64xf32>
    %cst_5 = arith.constant 0.000000e+00 : f32
    %7 = vector.broadcast %cst_5 : f32 to vector<8x64xf32>
    %8 = arith.maximumf %6, %7 : vector<8x64xf32>
    %9 = arith.truncf %8 : vector<8x64xf32> to vector<8x64xbf16>
    %c0_6 = arith.constant 0 : index
    %c0_7 = arith.constant 0 : index
    %10 = vector.load %arg4[%c0_6, %c0_7] : memref<64x32xbf16, #tpu.memory_space<vmem>>, vector<64x32xbf16>
    %cst_8 = arith.constant dense<0.000000e+00> : vector<8x32xf32>
    %11 = tpu.matmul %9, %10, %cst_8 {dimension_numbers = #tpu.dot_dimension_numbers<[1], [0], [0], [1], [0, 0, 1, 1], [], []>} : vector<8x64xbf16>, vector<64x32xbf16>, vector<8x32xf32> -> vector<8x32xf32>
    %c0_9 = arith.constant 0 : index
    %c0_10 = arith.constant 0 : index
    %12 = vector.load %arg5[%c0_9, %c0_10] : memref<1x32xf32, #tpu.memory_space<vmem>>, vector<1x32xf32>
    %13 = vector.broadcast %12 : vector<1x32xf32> to vector<8x32xf32>
    %14 = arith.addf %11, %13 : vector<8x32xf32>
    %cst_11 = arith.constant 0.000000e+00 : f32
    %15 = vector.broadcast %cst_11 : f32 to vector<8x32xf32>
    %16 = arith.maximumf %14, %15 : vector<8x32xf32>
    %17 = arith.truncf %16 : vector<8x32xf32> to vector<8x32xbf16>
    %c0_12 = arith.constant 0 : index
    %c0_13 = arith.constant 0 : index
    %18 = vector.load %arg6[%c0_12, %c0_13] : memref<32x8xbf16, #tpu.memory_space<vmem>>, vector<32x8xbf16>
    %cst_14 = arith.constant dense<0.000000e+00> : vector<8x8xf32>
    %19 = tpu.matmul %17, %18, %cst_14 {dimension_numbers = #tpu.dot_dimension_numbers<[1], [0], [0], [1], [0, 0, 1, 1], [], []>} : vector<8x32xbf16>, vector<32x8xbf16>, vector<8x8xf32> -> vector<8x8xf32>
    %c0_15 = arith.constant 0 : index
    %c0_16 = arith.constant 0 : index
    %20 = vector.load %arg7[%c0_15, %c0_16] : memref<1x8xf32, #tpu.memory_space<vmem>>, vector<1x8xf32>
    %21 = vector.broadcast %20 : vector<1x8xf32> to vector<8x8xf32>
    %22 = arith.addf %19, %21 : vector<8x8xf32>
    %c0_17 = arith.constant 0 : index
    %c0_18 = arith.constant 0 : index
    %23 = vector.load %arg8[%c0_17, %c0_18] : memref<8x8xf32, #tpu.memory_space<vmem>>, vector<8x8xf32>
    tpu.vector_store %arg8[%c0_17, %c0_18], %22 {strides = array<i32>} : memref<8x8xf32, #tpu.memory_space<vmem>>, vector<8x8xf32>,
    return
  }
  func.func @transform_0(%arg0: i32) -> (i32, i32) {
    %c0_i32 = arith.constant 0 : i32
    %c0_i32_0 = arith.constant 0 : i32
    return %arg0, %c0_i32 : i32, i32
  }
  func.func @transform_1(%arg0: i32) -> (i32, i32) {
    %c0_i32 = arith.constant 0 : i32
    %c0_i32_0 = arith.constant 0 : i32
    %c0_i32_1 = arith.constant 0 : i32
    return %c0_i32, %c0_i32_0 : i32, i32
  }
  func.func @transform_2(%arg0: i32) -> (i32, i32) {
    %c0_i32 = arith.constant 0 : i32
    %c0_i32_0 = arith.constant 0 : i32
    %c0_i32_1 = arith.constant 0 : i32
    return %c0_i32, %c0_i32_0 : i32, i32
  }
  func.func @transform_3(%arg0: i32) -> (i32, i32) {
    %c0_i32 = arith.constant 0 : i32
    %c0_i32_0 = arith.constant 0 : i32
    %c0_i32_1 = arith.constant 0 : i32
    return %c0_i32, %c0_i32_0 : i32, i32
  }
  func.func @transform_4(%arg0: i32) -> (i32, i32) {
    %c0_i32 = arith.constant 0 : i32
    %c0_i32_0 = arith.constant 0 : i32
    %c0_i32_1 = arith.constant 0 : i32
    return %c0_i32, %c0_i32_0 : i32, i32
  }
  func.func @transform_5(%arg0: i32) -> (i32, i32) {
    %c0_i32 = arith.constant 0 : i32
    %c0_i32_0 = arith.constant 0 : i32
    %c0_i32_1 = arith.constant 0 : i32
    return %c0_i32, %c0_i32_0 : i32, i32
  }
  func.func @transform_6(%arg0: i32) -> (i32, i32) {
    %c0_i32 = arith.constant 0 : i32
    %c0_i32_0 = arith.constant 0 : i32
    %c0_i32_1 = arith.constant 0 : i32
    return %c0_i32, %c0_i32_0 : i32, i32
  }
  func.func @transform_7(%arg0: i32) -> (i32, i32) {
    %c0_i32 = arith.constant 0 : i32
    %c0_i32_0 = arith.constant 0 : i32
    return %arg0, %c0_i32 : i32, i32
  }
}

</mosaic_0001>

<bundles_post_ra>
// kernel: tpu_custom_call.1
= control target key start
LH: loop header
LB: loop body
LE: loop exit
PB: predicated region body
PF: predicated region fallthrough
CT: control target
= control target key end

     0   :  { %s670_s24 = smov 0   ;;  %s727_s0 = inlined_call_operand.vmem [shape: f32[16,16], index: 0, kind: input, shape index: {}]   ;;  %s728_s1 = inlined_call_operand.vmem [shape: bf16[16,64], index: 1, kind: input, shape index: {}]   ;;  %s729_s2 = inlined_call_operand.vmem [shape: f32[1,64], index: 2, kind: input, shape index: {}]   ;;  %s730_s3 = inlined_call_operand.vmem [shape: bf16[64,32], index: 3, kind: input, shape index: {}]   ;;  %s731_s4 = inlined_call_operand.vmem [shape: f32[1,32], index: 4, kind: input, shape index: {}]   ;;  %s732_s5 = inlined_call_operand.vmem [shape: bf16[32,8], index: 5, kind: input, shape index: {}]   ;;  %s733_s6 = inlined_call_operand.vmem [shape: f32[1,8], index: 6, kind: input, shape index: {}]   ;;  %s734_s7 = inlined_call_operand.vmem [shape: f32[16,8], index: 7, kind: output, shape index: {}]  }
   0x1 LB: > { %s545_s25 = sadd.s32 4294967295, %s626_s24   ;;  %p549_p0 = scmp.ge.s32.totalorder %s626_s24, 1  ;;  %s626_s24 = sphi %s670_s24, %s17_s24  }
   0x2   : > { %p236_p1 = scmp.lt.s32.totalorder %s626_s24, 3 }
   0x4   : > { %p237_p2 = pnand %p549_p0, %p236_p1 }
   0x5   : > { %p266_p3 = scmp.lt.s32.totalorder (!%p237_p2), %s545_s25, 1 }
   0x6   : > { %240 = sbr.rel (%p237_p2) target bundleno = 614 (0x266), region = 48 }
   0xb   : > { %v613_v0 = vld [vmem:[%s728_s1] sm:$0xff]   ;;  %v628_v1 = vmov 0.0   ;;  %v614_v2 = vld [vmem:[%s730_s3 + $0x18] sm:$0xff]   ;;  %vm629_vm0 = vmmov 0   ;;  %s736_s25 = smov (!%p266_p3, %s545_s25), 1  ;;  %v615_v3 = vld [vmem:[%s730_s3 + $0x10] sm:$0xff]  }
   0xc   : > { %577 = vmatprep.subr.bf16.mxu0 %v628_v1  ;;  %583 = vmatprep.subr.bf16.mxu1 %v628_v1  ;;  %s550_s9 = sshll.u32 %s736_s25, 3  ;;  %vm292_vm1 = vcmask 130048   ;;  %v616_v6 = vld [vmem:[%s730_s3 + $0x8] sm:$0xff]   ;;  %v617_v7 = vld [vmem:[%s730_s3] sm:$0xff]   ;;  %vm377_vm2 = vcmask 523264   ;;  %vm446_vm3 = vcmask 261120  }
   0xd   : > { %578 = vmatpush3.bf16.msra.mxu0 %v613_v0  ;;  %579 = vmatprep.mubr.msk.bf16.mxu0 %vm629_vm0, %v628_v1  ;;  %s269_s12 = scalar_lea.vmem %s727_s0, %s550_s9  ;;  %v618_v8 = vld [vmem:[%s732_s5 + $0x8] sm:$0xff]   ;;  %v552_v9 = vld [vmem:[%s729_s2] ss:$0 sm:$0xff]  ;;  %s273_s8 = scalar_lea.vmem %s734_s7, %s550_s9  ;;  %vm490_vm4 = vcmask 64512  }
   0xe   : > { %584 = vmatpush3.bf16.msra.mxu1 %v614_v2  ;;  %591 = vmatprep.mubr.msk.bf16.mxu1 %vm629_vm0, %v628_v1  ;;  %v275_v4 = vld [vmem:[%s269_s12] sm:$0xff] }
   0xf   : > { %585 = vmatprep.subr.bf16.mxu1 %v628_v1  ;;  %595 = vmatprep.subr.bf16.mxu0 %v628_v1  ;;  %v276_v5 = vpack.c.bf16 %v275_v4, %v275_v4  ;;  %v619_v17 = vld [vmem:[%s732_s5] sm:$0xff]  }
  0x10   : > { %v555_v18 = vld [vmem:[%s731_s4] ss:$0 sm:$0xff] }
  0x11   : > { %580 = vmatmul.mubr.msk.bf16.vlgmr.msra.gmra.mxu0 %vm292_vm1, %v276_v5  ;;  %v561_v26 = vld [vmem:[%s733_s6] ss:$0 sm:$0xff] }
  0x12   : > { %586 = vmatpush3.bf16.msra.mxu1 %v615_v3  ;;  %599 = vmatprep.mubr.msk.bf16.mxu0 %vm629_vm0, %v628_v1 }
  0x13   : > { %587 = vmatprep.subr.bf16.mxu1 %v628_v1  ;;  %596 = vmatpush3.bf16.msra.mxu0 %v618_v8 }
  0x14   : > { %597 = vmatprep.subr.bf16.mxu0 %v628_v1 }
  0x16   : > { %588 = vmatpush3.bf16.msra.mxu1 %v616_v6 }
  0x17   : > { %589 = vmatprep.subr.bf16.mxu1 %v628_v1  ;;  %598 = vmatpush3.bf16.msra.mxu0 %v619_v17 }
  0x1a   : > { %590 = vmatpush3.bf16.msra.mxu1 %v617_v7 }
  0xd1   : > { %v330_v10 = vpop.f32.mrf.mxu0 }
  0xd2   : > { %v331_v11 = vadd.f32 %v552_v9, %v330_v10 }
  0xd3   : > { %v581_v12 = vpop.f32.mrf.mxu0 }
  0xd4   : > { %v336_v13 = vmax.f32 %v331_v11, 0.0 }
  0xd5   : > { %v333_v14 = vpop.f32.mrf.mxu0 }
  0xd6   : > { %v337_v15 = vpack.c.bf16 %v336_v13, %v336_v13 }
  0xd7   : > { %v582_v16 = vpop.f32.mrf.mxu0 }
  0xd8   : > { %592 = vmatmul.mubr.msk.bf16.vlgmr.msra.gmra.mxu1 %vm377_vm2, %v337_v15 }
 0x198   : > { %v415_v19 = vpop.f32.mrf.mxu1 }
 0x199   : > { %v416_v20 = vadd.f32 %v555_v18, %v415_v19 }
 0x19a   : > { %v593_v21 = vpop.f32.mrf.mxu1 }
 0x19b   : > { %v421_v22 = vmax.f32 %v416_v20, 0.0 }
 0x19c   : > { %v418_v23 = vpop.f32.mrf.mxu1 }
 0x19d   : > { %v422_v24 = vpack.c.bf16 %v421_v22, %v421_v22 }
 0x19e   : > { %v594_v25 = vpop.f32.mrf.mxu1 }
 0x19f   : > { %600 = vmatmul.mubr.msk.bf16.vlgmr.msra.gmra.mxu0 %vm446_vm3, %v422_v24 }
 0x25f   : > { %v484_v27 = vpop.f32.mrf.mxu0 }
 0x260   : > { %v485_v28 = vadd.f32 %v561_v26, %v484_v27 }
 0x261   : > { %v601_v29 = vpop.f32.mrf.mxu0 }
 0x262   : > { %491 = vst.msk [vmem:[%s273_s8] sm:$0xff] %vm490_vm4, %v485_v28 }
 0x263   : > { %v487_v30 = vpop.f32.mrf.mxu0 }
 0x265   : > { %v602_v31 = vpop.f32.mrf.mxu0 }
 0x266 PF: > { %s17_s24 = sadd.s32 1, %s626_s24  }
 0x267   : > { %p14_p4 = scmp.ge.s32.totalorder %s17_s24, 4  }
 0x269   :  { %16 = sbr.rel (!%p14_p4) target bundleno = 1 (0x1), region = 78 }

</bundles_post_ra>
